<compile_context>
chip_gen: v6e
topology: v6e:2x2x1
jax: 0.10.0
libtpu: 0.0.40
codegen_flags: <defaults>
</compile_context>

<pallas_src>
import functools

import jax
import jax.numpy as jnp
from jax.experimental import pallas as pl
from jax.experimental.pallas import tpu as pltpu

EPS = 1e-5


def _round_up(x, m):
    return ((x + m - 1) // m) * m


def _mxu_align():
    # 256-wide MXU on v6e / v7x, 128-wide on v4 / v5.  Only affects how far H
    # is zero-padded (padded columns cost nothing but the extra zeros).
    try:
        kind = jax.devices()[0].device_kind.lower()
    except Exception:
        return 128
    if any(tag in kind for tag in ("v6", "v7", "7x", "trillium")):
        return 256
    return 128


def _vmem_capacity_bytes():
    try:
        info = pltpu.get_tpu_info()
        return int(getattr(info, "vmem_capacity_bytes", 64 * 1024 * 1024))
    except Exception:
        return 64 * 1024 * 1024


def prenorm_linear_kernel(x_ref, w_ref, b_ref, o_ref, *, inv_d):
    # x_ref: (TN, D)      tile of flattened tokens (ragged last tile is masked)
    # w_ref: (D, H_pad)   gamma-scaled, transposed Linear weight (VMEM resident)
    # b_ref: (1, H_pad)   f32, = b + beta @ w.T  (beta folded through Linear)
    # o_ref: (TN, H_pad)
    x = x_ref[...].astype(jnp.float32)

    # LayerNorm statistics over the last dim: one reduction pass, f32.
    s1 = jnp.sum(x, axis=-1, keepdims=True)
    s2 = jnp.sum(x * x, axis=-1, keepdims=True)
    mean = s1 * inv_d
    var = jnp.maximum(s2 * inv_d - mean * mean, 0.0)   # clamp cancellation error
    inv = jax.lax.rsqrt(var + EPS)

    # gamma/beta already folded into w_ref/b_ref -> only the normalization runs
    # on the VPU.
    y = (x - mean) * inv

    # fn: Linear(D, H).  Feed the MXU in the weight's dtype, accumulate in f32.
    out = jnp.dot(y.astype(w_ref.dtype), w_ref[...],
                  preferred_element_type=jnp.float32)
    out = out + b_ref[...]
    o_ref[...] = out.astype(o_ref.dtype)


def prenorm_linear(x, gamma, beta, w, b, *, tn=512, matmul_dtype=None):
    """PreNorm(dim, Linear(dim, hidden)) forward.

    x: (B, S, D); gamma/beta: (D,); w: (H, D) [PyTorch Linear layout]; b: (H,)
    matmul_dtype: optional MXU operand dtype (e.g. jnp.bfloat16 on v5e);
      default keeps the weight dtype so results match the f32 reference.
    """
    B, S, D = x.shape
    H = w.shape[0]
    N = B * S

    align = _mxu_align()
    H_pad = _round_up(H, align)
    mm_dtype = jnp.dtype(matmul_dtype) if matmul_dtype is not None else w.dtype

    # ---- fold the LayerNorm affine into the Linear (once, f32, outside kernel)
    w32 = w.astype(jnp.float32)                                     # (H, D)
    w_eff = (w32 * gamma.astype(jnp.float32)[None, :]).T            # (D, H) f32
    b_eff = b.astype(jnp.float32) + beta.astype(jnp.float32) @ w32.T  # (H,)
    w_eff = jnp.pad(w_eff, ((0, 0), (0, H_pad - H))).astype(mm_dtype)
    b_eff = jnp.pad(b_eff, (0, H_pad - H)).reshape(1, H_pad)

    # x stays unpadded: feature axis is a full-extent block dim and the token
    # axis is tiled with a ragged last block.
    x2 = x.reshape(N, D)

    # ---- per-generation VMEM budget and row-tile size
    vmem_limit = int(_vmem_capacity_bytes() * 0.85)
    x_item = jnp.dtype(x.dtype).itemsize
    w_item = jnp.dtype(mm_dtype).itemsize
    resident = 2 * (D * H_pad * w_item + H_pad * 4)   # worst case: double-buffered
    per_row = (2 * D * x_item            # x tile (double-buffered)
               + 2 * H_pad * x_item      # out tile (double-buffered)
               + 4 * D * 4               # f32 temporaries over D
               + 2 * H_pad * 4)          # f32 matmul result / bias add
    avail = vmem_limit - resident - (4 << 20)
    tn_budget = max(8, (avail // per_row) // 8 * 8) if avail > per_row * 8 else 8

    n_rows = _round_up(N, 8)
    TN = max(8, _round_up(min(tn, n_rows, tn_budget), 8))
    # Give the v7x megacore at least two row tiles to split when there is work.
    if N > 2 * 128:
        TN = min(TN, _round_up(pl.cdiv(N, 2), 8))
    grid = (pl.cdiv(N, TN),)

    kernel = functools.partial(prenorm_linear_kernel, inv_d=float(1.0 / D))

    cost = pl.CostEstimate(
        flops=2 * N * D * H_pad + 8 * N * D,
        transcendentals=N,
        bytes_accessed=N * D * x_item + D * H_pad * w_item + N * H_pad * x_item,
    )

    def make_call(single_buffer_consts):
        const_kw = ({"pipeline_mode": pl.Buffered(1)}
                    if single_buffer_consts else {})
        return pl.pallas_call(
            kernel,
            out_shape=jax.ShapeDtypeStruct((N, H_pad), x.dtype),
            grid_spec=pltpu.PrefetchScalarGridSpec(
                num_scalar_prefetch=0,
                grid=grid,
                in_specs=[
                    pl.BlockSpec((TN, D), lambda i: (i, 0)),                 # x tile
                    pl.BlockSpec((D, H_pad), lambda i: (0, 0), **const_kw),  # weight
                    pl.BlockSpec((1, H_pad), lambda i: (0, 0), **const_kw),  # bias
                ],
                out_specs=pl.BlockSpec((TN, H_pad), lambda i: (i, 0)),
            ),
            compiler_params=pltpu.CompilerParams(
                dimension_semantics=("parallel",),
                vmem_limit_bytes=vmem_limit,
            ),
            cost_estimate=cost,
        )

    try:
        out = make_call(True)(x2, w_eff, b_eff)
    except Exception:
        # Fallback if this jax build rejects pipeline_mode on the main
        # pipeline; only cost is a double-buffered (but resident) weight.
        out = make_call(False)(x2, w_eff, b_eff)

    if H_pad != H:
        out = out[:, :H]
    return out.reshape(B, S, H)


def prenorm_linear_ref(x, gamma, beta, w, b):
    mean = jnp.mean(x, axis=-1, keepdims=True)
    var = jnp.mean((x - mean) ** 2, axis=-1, keepdims=True)
    y = (x - mean) / jnp.sqrt(var + EPS) * gamma + beta
    return jnp.einsum("bsd,hd->bsh", y, w) + b


def _check(B, S, D, H, key, tn):
    kx, kg, kbt, kw, kb = jax.random.split(key, 5)
    x = jax.random.normal(kx, (B, S, D), dtype=jnp.float32)
    gamma = 1.0 + 0.1 * jax.random.normal(kg, (D,), dtype=jnp.float32)
    beta = 0.1 * jax.random.normal(kbt, (D,), dtype=jnp.float32)
    w = jax.random.normal(kw, (H, D), dtype=jnp.float32) * 0.05
    b = jax.random.normal(kb, (H,), dtype=jnp.float32) * 0.05

    out = jax.block_until_ready(prenorm_linear(x, gamma, beta, w, b, tn=tn))
    ref = prenorm_linear_ref(x, gamma, beta, w, b)
    assert out.shape == (B, S, H), out.shape
    err = float(jnp.max(jnp.abs(out - ref)))
    assert err < 2e-4, err


if __name__ == "__main__":
    key = jax.random.PRNGKey(0)
    k1, k2 = jax.random.split(key)

    # Small toy shape consistent with the module (D, H < 128 exercise the
    # H-padding and the full-extent, unpadded feature block).
    _check(B=2, S=8, D=32, H=32, key=k1, tn=512)

    # Multiple row tiles with a ragged last tile (N = 400) and non-aligned D/H.
    _check(B=2, S=200, D=96, H=160, key=k2, tn=128)

    # TODO(synk): PreNorm wraps an arbitrary `fn`; only fn = Linear(dim, hidden)
    # is fused here — other wrapped modules need their own fused kernels.
    print("KERNEL_OK")
</pallas_src>

<mosaic_0001>
module attributes {stable_mosaic.version = 11 : i64} {
  func.func @prenorm_linear_kernel(%arg0: i32, %arg1: memref<16x32xf32, #tpu.memory_space<vmem>>, %arg2: memref<32x128xf32, #tpu.memory_space<vmem>>, %arg3: memref<1x128xf32, #tpu.memory_space<vmem>>, %arg4: memref<16x128xf32, #tpu.memory_space<vmem>>) attributes {dimension_semantics = [#tpu.dimension_semantics<parallel>], iteration_bounds = array<i64: 1>, scalar_prefetch = 0 : i64, scratch_operands = 0 : i64, tpu.core_type = #tpu.core_type<tc>, window_params = [{transform_indices = @transform_0, window_bounds = array<i64: 16, 32>}, {pipeline_mode = #tpu.pipeline_mode<synchronous>, transform_indices = @transform_1, window_bounds = array<i64: 32, 128>}, {pipeline_mode = #tpu.pipeline_mode<synchronous>, transform_indices = @transform_2, window_bounds = array<i64: 1, 128>}, {transform_indices = @transform_3, window_bounds = array<i64: 16, 128>}]} {
    %c0 = arith.constant 0 : index
    %c0_0 = arith.constant 0 : index
    %0 = vector.load %arg1[%c0, %c0_0] : memref<16x32xf32, #tpu.memory_space<vmem>>, vector<16x32xf32>
    %cst = arith.constant dense<0.000000e+00> : vector<16xf32>
    %1 = vector.multi_reduction <add>, %0, %cst [1] : vector<16x32xf32> to vector<16xf32>
    %2 = vector.shape_cast %1 : vector<16xf32> to vector<16x1xf32>
    %3 = arith.mulf %0, %0 : vector<16x32xf32>
    %cst_1 = arith.constant dense<0.000000e+00> : vector<16xf32>
    %4 = vector.multi_reduction <add>, %3, %cst_1 [1] : vector<16x32xf32> to vector<16xf32>
    %5 = vector.shape_cast %4 : vector<16xf32> to vector<16x1xf32>
    %cst_2 = arith.constant 3.125000e-02 : f32
    %6 = vector.broadcast %cst_2 : f32 to vector<16x1xf32>
    %7 = arith.mulf %2, %6 : vector<16x1xf32>
    %cst_3 = arith.constant 3.125000e-02 : f32
    %8 = vector.broadcast %cst_3 : f32 to vector<16x1xf32>
    %9 = arith.mulf %5, %8 : vector<16x1xf32>
    %10 = arith.mulf %7, %7 : vector<16x1xf32>
    %11 = arith.subf %9, %10 : vector<16x1xf32>
    %cst_4 = arith.constant 0.000000e+00 : f32
    %12 = vector.broadcast %cst_4 : f32 to vector<16x1xf32>
    %13 = arith.maximumf %11, %12 : vector<16x1xf32>
    %cst_5 = arith.constant 9.99999974E-6 : f32
    %14 = vector.broadcast %cst_5 : f32 to vector<16x1xf32>
    %15 = arith.addf %13, %14 : vector<16x1xf32>
    %16 = math.rsqrt %15 : vector<16x1xf32>
    %17 = vector.broadcast %7 : vector<16x1xf32> to vector<16x32xf32>
    %18 = arith.subf %0, %17 : vector<16x32xf32>
    %19 = vector.broadcast %16 : vector<16x1xf32> to vector<16x32xf32>
    %20 = arith.mulf %18, %19 : vector<16x32xf32>
    %c0_6 = arith.constant 0 : index
    %c0_7 = arith.constant 0 : index
    %21 = vector.load %arg2[%c0_6, %c0_7] : memref<32x128xf32, #tpu.memory_space<vmem>>, vector<32x128xf32>
    %cst_8 = arith.constant dense<0.000000e+00> : vector<16x128xf32>
    %22 = tpu.matmul %20, %21, %cst_8 {dimension_numbers = #tpu.dot_dimension_numbers<[1], [0], [0], [1], [0, 0, 1, 1], [], []>} : vector<16x32xf32>, vector<32x128xf32>, vector<16x128xf32> -> vector<16x128xf32>
    %c0_9 = arith.constant 0 : index
    %c0_10 = arith.constant 0 : index
    %23 = vector.load %arg3[%c0_9, %c0_10] : memref<1x128xf32, #tpu.memory_space<vmem>>, vector<1x128xf32>
    %24 = vector.broadcast %23 : vector<1x128xf32> to vector<16x128xf32>
    %25 = arith.addf %22, %24 : vector<16x128xf32>
    %c0_11 = arith.constant 0 : index
    %c0_12 = arith.constant 0 : index
    %26 = vector.load %arg4[%c0_11, %c0_12] : memref<16x128xf32, #tpu.memory_space<vmem>>, vector<16x128xf32>
    tpu.vector_store %arg4[%c0_11, %c0_12], %25 {strides = array<i32>} : memref<16x128xf32, #tpu.memory_space<vmem>>, vector<16x128xf32>,
    return
  }
  func.func @transform_0(%arg0: i32) -> (i32, i32) {
    %c0_i32 = arith.constant 0 : i32
    %c0_i32_0 = arith.constant 0 : i32
    return %arg0, %c0_i32 : i32, i32
  }
  func.func @transform_1(%arg0: i32) -> (i32, i32) {
    %c0_i32 = arith.constant 0 : i32
    %c0_i32_0 = arith.constant 0 : i32
    %c0_i32_1 = arith.constant 0 : i32
    return %c0_i32, %c0_i32_0 : i32, i32
  }
  func.func @transform_2(%arg0: i32) -> (i32, i32) {
    %c0_i32 = arith.constant 0 : i32
    %c0_i32_0 = arith.constant 0 : i32
    %c0_i32_1 = arith.constant 0 : i32
    return %c0_i32, %c0_i32_0 : i32, i32
  }
  func.func @transform_3(%arg0: i32) -> (i32, i32) {
    %c0_i32 = arith.constant 0 : i32
    %c0_i32_0 = arith.constant 0 : i32
    return %arg0, %c0_i32 : i32, i32
  }
}

module attributes {stable_mosaic.version = 11 : i64} {
  func.func @prenorm_linear_kernel(%arg0: i32, %arg1: memref<16x32xf32, #tpu.memory_space<vmem>>, %arg2: memref<32x128xf32, #tpu.memory_space<vmem>>, %arg3: memref<1x128xf32, #tpu.memory_space<vmem>>, %arg4: memref<16x128xf32, #tpu.memory_space<vmem>>) attributes {dimension_semantics = [#tpu.dimension_semantics<parallel>], iteration_bounds = array<i64: 1>, scalar_prefetch = 0 : i64, scratch_operands = 0 : i64, tpu.core_type = #tpu.core_type<tc>, window_params = [{transform_indices = @transform_0, window_bounds = array<i64: 16, 32>}, {pipeline_mode = #tpu.pipeline_mode<synchronous>, transform_indices = @transform_1, window_bounds = array<i64: 32, 128>}, {pipeline_mode = #tpu.pipeline_mode<synchronous>, transform_indices = @transform_2, window_bounds = array<i64: 1, 128>}, {transform_indices = @transform_3, window_bounds = array<i64: 16, 128>}]} {
    %c0 = arith.constant 0 : index
    %c0_0 = arith.constant 0 : index
    %0 = vector.load %arg1[%c0, %c0_0] : memref<16x32xf32, #tpu.memory_space<vmem>>, vector<16x32xf32>
    %cst = arith.constant dense<0.000000e+00> : vector<16xf32>
    %1 = vector.multi_reduction <add>, %0, %cst [1] : vector<16x32xf32> to vector<16xf32>
    %2 = vector.shape_cast %1 : vector<16xf32> to vector<16x1xf32>
    %3 = arith.mulf %0, %0 : vector<16x32xf32>
    %cst_1 = arith.constant dense<0.000000e+00> : vector<16xf32>
    %4 = vector.multi_reduction <add>, %3, %cst_1 [1] : vector<16x32xf32> to vector<16xf32>
    %5 = vector.shape_cast %4 : vector<16xf32> to vector<16x1xf32>
    %cst_2 = arith.constant 3.125000e-02 : f32
    %6 = vector.broadcast %cst_2 : f32 to vector<16x1xf32>
    %7 = arith.mulf %2, %6 : vector<16x1xf32>
    %cst_3 = arith.constant 3.125000e-02 : f32
    %8 = vector.broadcast %cst_3 : f32 to vector<16x1xf32>
    %9 = arith.mulf %5, %8 : vector<16x1xf32>
    %10 = arith.mulf %7, %7 : vector<16x1xf32>
    %11 = arith.subf %9, %10 : vector<16x1xf32>
    %cst_4 = arith.constant 0.000000e+00 : f32
    %12 = vector.broadcast %cst_4 : f32 to vector<16x1xf32>
    %13 = arith.maximumf %11, %12 : vector<16x1xf32>
    %cst_5 = arith.constant 9.99999974E-6 : f32
    %14 = vector.broadcast %cst_5 : f32 to vector<16x1xf32>
    %15 = arith.addf %13, %14 : vector<16x1xf32>
    %16 = math.rsqrt %15 : vector<16x1xf32>
    %17 = vector.broadcast %7 : vector<16x1xf32> to vector<16x32xf32>
    %18 = arith.subf %0, %17 : vector<16x32xf32>
    %19 = vector.broadcast %16 : vector<16x1xf32> to vector<16x32xf32>
    %20 = arith.mulf %18, %19 : vector<16x32xf32>
    %c0_6 = arith.constant 0 : index
    %c0_7 = arith.constant 0 : index
    %21 = vector.load %arg2[%c0_6, %c0_7] : memref<32x128xf32, #tpu.memory_space<vmem>>, vector<32x128xf32>
    %cst_8 = arith.constant dense<0.000000e+00> : vector<16x128xf32>
    %22 = tpu.matmul %20, %21, %cst_8 {dimension_numbers = #tpu.dot_dimension_numbers<[1], [0], [0], [1], [0, 0, 1, 1], [], []>} : vector<16x32xf32>, vector<32x128xf32>, vector<16x128xf32> -> vector<16x128xf32>
    %c0_9 = arith.constant 0 : index
    %c0_10 = arith.constant 0 : index
    %23 = vector.load %arg3[%c0_9, %c0_10] : memref<1x128xf32, #tpu.memory_space<vmem>>, vector<1x128xf32>
    %24 = vector.broadcast %23 : vector<1x128xf32> to vector<16x128xf32>
    %25 = arith.addf %22, %24 : vector<16x128xf32>
    %c0_11 = arith.constant 0 : index
    %c0_12 = arith.constant 0 : index
    %26 = vector.load %arg4[%c0_11, %c0_12] : memref<16x128xf32, #tpu.memory_space<vmem>>, vector<16x128xf32>
    tpu.vector_store %arg4[%c0_11, %c0_12], %25 {strides = array<i32>} : memref<16x128xf32, #tpu.memory_space<vmem>>, vector<16x128xf32>,
    return
  }
  func.func @transform_0(%arg0: i32) -> (i32, i32) {
    %c0_i32 = arith.constant 0 : i32
    %c0_i32_0 = arith.constant 0 : i32
    return %arg0, %c0_i32 : i32, i32
  }
  func.func @transform_1(%arg0: i32) -> (i32, i32) {
    %c0_i32 = arith.constant 0 : i32
    %c0_i32_0 = arith.constant 0 : i32
    %c0_i32_1 = arith.constant 0 : i32
    return %c0_i32, %c0_i32_0 : i32, i32
  }
  func.func @transform_2(%arg0: i32) -> (i32, i32) {
    %c0_i32 = arith.constant 0 : i32
    %c0_i32_0 = arith.constant 0 : i32
    %c0_i32_1 = arith.constant 0 : i32
    return %c0_i32, %c0_i32_0 : i32, i32
  }
  func.func @transform_3(%arg0: i32) -> (i32, i32) {
    %c0_i32 = arith.constant 0 : i32
    %c0_i32_0 = arith.constant 0 : i32
    return %arg0, %c0_i32 : i32, i32
  }
}

</mosaic_0001>

<bundles_post_ra>
// kernel: tpu_custom_call.1
= control target key start
LH: loop header
LB: loop body
LE: loop exit
PB: predicated region body
PF: predicated region fallthrough
CT: control target
= control target key end

     0   :  { %8 = vsyncpa [#allocation3], 0  ;;  %s337_s0 = inlined_call_operand.hbm [shape: f32[16,32], index: 0, kind: input, shape index: {}]   ;;  %s338_s1 = inlined_call_operand.hbm [shape: f32[32,128], index: 1, kind: input, shape index: {}]   ;;  %s339_s2 = inlined_call_operand.vmem [shape: f32[1,128], index: 2, kind: input, shape index: {}]   ;;  %s340_s3 = inlined_call_operand.hbm [shape: f32[16,128], index: 3, kind: output, shape index: {}]  }
   0x1   :  { %9 = vsyncpa [#allocation6], 0 }
   0x2   :  { %10 = vsyncpa [#allocation4], 0  ;;  %s285_s12 = smov [#allocation2]  }
   0x3   :  { %s16_s13 = sshll.u32 %s285_s12, 4  ;;  %s17_s13 = int_to_ptr.vmem [resolvable:$true] %s16_s13 }
   0x4   :  { %s227_s14 = scalar_lea.vmem %s17_s13, 256  ;;  %p232_p1 = scmp.lt.s32.totalorder %s17_s13, %s17_s13 }
   0x5   :  { %p228_p0 = scmp.ne.s32.totalorder %s17_s13, %s227_s14  ;;  %p233_p2 = scmp.lt.s32.totalorder %s227_s14, %s227_s14 }
   0x7   :  { %p234_p3 = por %p233_p2, %p232_p1 }
   0x9   :  { %p235_p4 = pnand %p234_p3, %p228_p0 }
   0xb   :  { %238 = shalt.err (!%p235_p4)
}
   0xc   :  { %s286_s15 = smov 128   ;;  %s287_s16 = smov 8  }
   0xd   :  { %22 = dma.hbm_to_vmem [thread:$0]  %s337_s0, 256, %s17_s13, [#allocation3], %s286_s15, %s286_s15, %s287_s16  }
   0xe   :  { %s288_s19 = smov [#allocation5]  }
   0xf   :  { %s28_s20 = sshll.u32 %s288_s19, 4  ;;  %s29_s20 = int_to_ptr.vmem [resolvable:$true] %s28_s20 }
  0x10   :  { %s247_s21 = scalar_lea.vmem %s29_s20, 512  ;;  %p252_p6 = scmp.lt.s32.totalorder %s29_s20, %s29_s20 }
  0x11   :  { %p248_p5 = scmp.ne.s32.totalorder %s29_s20, %s247_s21  ;;  %p253_p7 = scmp.lt.s32.totalorder %s247_s21, %s247_s21 }
  0x13   :  { %p254_p8 = por %p253_p7, %p252_p6 }
  0x15   :  { %p255_p9 = pnand %p254_p8, %p248_p5 }
  0x17   :  { %258 = shalt.err (!%p255_p9)
}
  0x18   :  { %34 = dma.hbm_to_vmem [thread:$0]  %s338_s1, 512, %s29_s20, [#allocation6], %s286_s15, %s286_s15, %s287_s16  }
  0x19   :  { %279 = dma.done.wait [#allocation3], 256  }
  0x1a   :  { %280 = vsyncadd [#allocation3], 4294967040 }
  0x1b   :  { %281 = dma.done.wait [#allocation6], 512  }
  0x1c   :  { %282 = vsyncadd [#allocation6], 4294966784  ;;  %vm45_vm0 = vcmask 261120   ;;  %v43_v0 = vld [vmem:[#allocation2] sm:$0xff]  ;;  %v44_v1 = vld [vmem:[#allocation2 + $0x8] sm:$0xff]  ;;  %s289_s24 = smov [#allocation7]  }
  0x1d   :  { %v46_v2 = vsel %vm45_vm0, %v43_v0, 0.0  ;;  %v52_v3 = vmul.f32 %v43_v0, %v43_v0  ;;  %v53_v4 = vmul.f32 %v44_v1, %v44_v1  ;;  %v49_v6 = vsel %vm45_vm0, %v44_v1, 0.0  ;;  %v81_v8 = vld [vmem:[#allocation5 + $0x18] sm:$0xff]  ;;  %v80_v9 = vld [vmem:[#allocation5 + $0x10] sm:$0xff]  ;;  %v79_v10 = vld [vmem:[#allocation5 + $0x8] sm:$0xff]  ;;  %s177_s25 = sshll.u32 %s289_s24, 4  ;;  %s178_s25 = int_to_ptr.vmem [resolvable:$true] %s177_s25 }
  0x1e   :  { %47 = vadd.xlane.f32.xlu0 %v46_v2  ;;  %199 = vmatprep.subr.mxu0 %v81_v8  ;;  %v78_v11 = vld [vmem:[#allocation5] sm:$0xff]  ;;  %v190_v34 = vld [vmem:[%s339_s2] ss:$0 sm:$0xff]  ;;  %s259_s26 = scalar_lea.vmem %s178_s25, 256  ;;  %p264_p11 = scmp.lt.s32.totalorder %s178_s25, %s178_s25 }
  0x1f   :  { %v54_v5 = vsel %vm45_vm0, %v52_v3, 0.0  ;;  %v57_v7 = vsel %vm45_vm0, %v53_v4, 0.0  ;;  %200 = vmatpush3.msra.mxu0 %v81_v8  ;;  %p260_p10 = scmp.ne.s32.totalorder %s178_s25, %s259_s26  ;;  %p265_p12 = scmp.lt.s32.totalorder %s259_s26, %s259_s26 }
  0x20   :  { %55 = vadd.xlane.f32.xlu1 %v54_v5  ;;  %201 = vmatprep.subr.mxu0 %v80_v9 }
  0x21   :  { %202 = vmatpush3.msra.mxu0 %v80_v9  ;;  %p266_p13 = por %p265_p12, %p264_p11 }
  0x22   :  { %50 = vadd.xlane.f32.xlu0 %v49_v6  ;;  %203 = vmatprep.subr.mxu0 %v79_v10 }
  0x23   :  { %204 = vmatpush3.msra.mxu0 %v79_v10  ;;  %p267_p0 = pnand %p266_p13, %p260_p10 }
  0x24   :  { %58 = vadd.xlane.f32.xlu1 %v57_v7  ;;  %205 = vmatprep.subr.mxu0 %v78_v11 }
  0x25   :  { %206 = vmatpush3.msra.mxu0 %v78_v11 }
  0xa7   :  { %v48_v12 = vpop.xlane.xlu0 %47 }
  0xa8   :  { %v60_v13 = vmul.f32 0.03125, %v48_v12 }
  0xa9   :  { %v56_v14 = vpop.xlane.xlu1 %55 }
  0xaa   :  { %v64_v15 = vmul.f32 %v60_v13, %v60_v13  ;;  %v62_v16 = vmul.f32 0.03125, %v56_v14  ;;  %v74_v28 = vsub.f32 %v43_v0, %v60_v13 }
  0xab   :  { %v51_v17 = vpop.xlane.xlu0 %50 }
  0xac   :  { %v66_v18 = vsub.f32 %v62_v16, %v64_v15  ;;  %v61_v19 = vmul.f32 0.03125, %v51_v17 }
  0xad   :  { %v59_v20 = vpop.xlane.xlu1 %58 }
  0xae   :  { %v68_v21 = vmax.f32 %v66_v18, 0.0  ;;  %v65_v22 = vmul.f32 %v61_v19, %v61_v19  ;;  %v63_v23 = vmul.f32 0.03125, %v59_v20  ;;  %v75_v31 = vsub.f32 %v44_v1, %v61_v19 }
  0xb0   :  { %v70_v24 = vadd.f32 1e-05, %v68_v21  ;;  %v67_v25 = vsub.f32 %v63_v23, %v65_v22 }
  0xb2   :  { %215 = vrsqrt.f32 %v70_v24  ;;  %v69_v26 = vmax.f32 %v67_v25, 0.0 }
  0xb4   :  { %v71_v27 = vadd.f32 1e-05, %v69_v26 }
  0xb6   :  { %217 = vrsqrt.f32 %v71_v27 }
  0xbf   :  { %v216_v29 = vpop.eup %215 }
  0xc0   :  { %v76_v30 = vmul.f32 %v216_v29, %v74_v28 }
  0xc2   :  { %207 = vmatprep.mubr.msk.f32.mxu0 %vm45_vm0, %v76_v30 }
  0xc3   :  { %v218_v32 = vpop.eup %217 }
  0xc4   :  { %v77_v33 = vmul.f32 %v218_v32, %v75_v31 }
  0xc6   :  { %208 = vmatmul.mubr.msk.f32.vlgmr.msra.gmra.mxu0 %vm45_vm0, %v77_v33 }
 0x186   :  { %v209_v35 = vpop.f32.mrf.mxu0 }
 0x187   :  { %v167_v36 = vadd.f32 %v209_v35, %v190_v34 }
 0x188   :  { %v161_v37 = vpop.f32.mrf.mxu0 }
 0x189   :  { %171 = vst [vmem:[#allocation7 + $0x8] sm:$0xff] %v167_v36  ;;  %v162_v38 = vadd.f32 %v190_v34, %v161_v37 }
 0x18b   :  { %170 = vst [vmem:[#allocation7] sm:$0xff] %v162_v38 }
 0x18c   :  { %270 = shalt.err (!%p267_p0)
}
 0x18d   :  { %183 = dma.vmem_to_hbm [thread:$0]  %s178_s25, 256, %s340_s3, [#allocation4], %s286_s15, %s286_s15, %s287_s16  }
 0x18e   :  { %283 = dma.done.wait [#allocation4], 256  }
 0x18f   :  { %284 = vsyncadd [#allocation4], 4294967040 }
 0x190   :  { %187 = vsyncpa [#allocation3], 1 }
 0x191   :  { %188 = vsyncpa [#allocation6], 1 }
 0x192   :  { %189 = vsyncpa [#allocation4], 1 }

// kernel: tpu_custom_call.1
= control target key start
LH: loop header
LB: loop body
LE: loop exit
PB: predicated region body
PF: predicated region fallthrough
CT: control target
= control target key end

     0   :  { %8 = vsyncpa [#allocation3], 0  ;;  %s337_s0 = inlined_call_operand.hbm [shape: f32[16,32], index: 0, kind: input, shape index: {}]   ;;  %s338_s1 = inlined_call_operand.hbm [shape: f32[32,128], index: 1, kind: input, shape index: {}]   ;;  %s339_s2 = inlined_call_operand.vmem [shape: f32[1,128], index: 2, kind: input, shape index: {}]   ;;  %s340_s3 = inlined_call_operand.hbm [shape: f32[16,128], index: 3, kind: output, shape index: {}]  }
   0x1   :  { %9 = vsyncpa [#allocation6], 0 }
   0x2   :  { %10 = vsyncpa [#allocation4], 0  ;;  %s285_s12 = smov [#allocation2]  }
   0x3   :  { %s16_s13 = sshll.u32 %s285_s12, 4  ;;  %s17_s13 = int_to_ptr.vmem [resolvable:$true] %s16_s13 }
   0x4   :  { %s227_s14 = scalar_lea.vmem %s17_s13, 256  ;;  %p232_p1 = scmp.lt.s32.totalorder %s17_s13, %s17_s13 }
   0x5   :  { %p228_p0 = scmp.ne.s32.totalorder %s17_s13, %s227_s14  ;;  %p233_p2 = scmp.lt.s32.totalorder %s227_s14, %s227_s14 }
   0x7   :  { %p234_p3 = por %p233_p2, %p232_p1 }
   0x9   :  { %p235_p4 = pnand %p234_p3, %p228_p0 }
   0xb   :  { %238 = shalt.err (!%p235_p4)
}
   0xc   :  { %s286_s15 = smov 128   ;;  %s287_s16 = smov 8  }
   0xd   :  { %22 = dma.hbm_to_vmem [thread:$0]  %s337_s0, 256, %s17_s13, [#allocation3], %s286_s15, %s286_s15, %s287_s16  }
   0xe   :  { %s288_s19 = smov [#allocation5]  }
   0xf   :  { %s28_s20 = sshll.u32 %s288_s19, 4  ;;  %s29_s20 = int_to_ptr.vmem [resolvable:$true] %s28_s20 }
  0x10   :  { %s247_s21 = scalar_lea.vmem %s29_s20, 512  ;;  %p252_p6 = scmp.lt.s32.totalorder %s29_s20, %s29_s20 }
  0x11   :  { %p248_p5 = scmp.ne.s32.totalorder %s29_s20, %s247_s21  ;;  %p253_p7 = scmp.lt.s32.totalorder %s247_s21, %s247_s21 }
  0x13   :  { %p254_p8 = por %p253_p7, %p252_p6 }
  0x15   :  { %p255_p9 = pnand %p254_p8, %p248_p5 }
  0x17   :  { %258 = shalt.err (!%p255_p9)
}
  0x18   :  { %34 = dma.hbm_to_vmem [thread:$0]  %s338_s1, 512, %s29_s20, [#allocation6], %s286_s15, %s286_s15, %s287_s16  }
  0x19   :  { %279 = dma.done.wait [#allocation3], 256  }
  0x1a   :  { %280 = vsyncadd [#allocation3], 4294967040 }
  0x1b   :  { %281 = dma.done.wait [#allocation6], 512  }
  0x1c   :  { %282 = vsyncadd [#allocation6], 4294966784  ;;  %vm45_vm0 = vcmask 261120   ;;  %v43_v0 = vld [vmem:[#allocation2] sm:$0xff]  ;;  %v44_v1 = vld [vmem:[#allocation2 + $0x8] sm:$0xff]  ;;  %s289_s24 = smov [#allocation7]  }
  0x1d   :  { %v46_v2 = vsel %vm45_vm0, %v43_v0, 0.0  ;;  %v52_v3 = vmul.f32 %v43_v0, %v43_v0  ;;  %v53_v4 = vmul.f32 %v44_v1, %v44_v1  ;;  %v49_v6 = vsel %vm45_vm0, %v44_v1, 0.0  ;;  %v81_v8 = vld [vmem:[#allocation5 + $0x18] sm:$0xff]  ;;  %v80_v9 = vld [vmem:[#allocation5 + $0x10] sm:$0xff]  ;;  %v79_v10 = vld [vmem:[#allocation5 + $0x8] sm:$0xff]  ;;  %s177_s25 = sshll.u32 %s289_s24, 4  ;;  %s178_s25 = int_to_ptr.vmem [resolvable:$true] %s177_s25 }
  0x1e   :  { %47 = vadd.xlane.f32.xlu0 %v46_v2  ;;  %199 = vmatprep.subr.mxu0 %v81_v8  ;;  %v78_v11 = vld [vmem:[#allocation5] sm:$0xff]  ;;  %v190_v34 = vld [vmem:[%s339_s2] ss:$0 sm:$0xff]  ;;  %s259_s26 = scalar_lea.vmem %s178_s25, 256  ;;  %p264_p11 = scmp.lt.s32.totalorder %s178_s25, %s178_s25 }
  0x1f   :  { %v54_v5 = vsel %vm45_vm0, %v52_v3, 0.0  ;;  %v57_v7 = vsel %vm45_vm0, %v53_v4, 0.0  ;;  %200 = vmatpush3.msra.mxu0 %v81_v8  ;;  %p260_p10 = scmp.ne.s32.totalorder %s178_s25, %s259_s26  ;;  %p265_p12 = scmp.lt.s32.totalorder %s259_s26, %s259_s26 }
  0x20   :  { %55 = vadd.xlane.f32.xlu1 %v54_v5  ;;  %201 = vmatprep.subr.mxu0 %v80_v9 }
  0x21   :  { %202 = vmatpush3.msra.mxu0 %v80_v9  ;;  %p266_p13 = por %p265_p12, %p264_p11 }
  0x22   :  { %50 = vadd.xlane.f32.xlu0 %v49_v6  ;;  %203 = vmatprep.subr.mxu0 %v79_v10 }
  0x23   :  { %204 = vmatpush3.msra.mxu0 %v79_v10  ;;  %p267_p0 = pnand %p266_p13, %p260_p10 }
  0x24   :  { %58 = vadd.xlane.f32.xlu1 %v57_v7  ;;  %205 = vmatprep.subr.mxu0 %v78_v11 }
  0x25   :  { %206 = vmatpush3.msra.mxu0 %v78_v11 }
  0xa7   :  { %v48_v12 = vpop.xlane.xlu0 %47 }
  0xa8   :  { %v60_v13 = vmul.f32 0.03125, %v48_v12 }
  0xa9   :  { %v56_v14 = vpop.xlane.xlu1 %55 }
  0xaa   :  { %v64_v15 = vmul.f32 %v60_v13, %v60_v13  ;;  %v62_v16 = vmul.f32 0.03125, %v56_v14  ;;  %v74_v28 = vsub.f32 %v43_v0, %v60_v13 }
  0xab   :  { %v51_v17 = vpop.xlane.xlu0 %50 }
  0xac   :  { %v66_v18 = vsub.f32 %v62_v16, %v64_v15  ;;  %v61_v19 = vmul.f32 0.03125, %v51_v17 }
  0xad   :  { %v59_v20 = vpop.xlane.xlu1 %58 }
  0xae   :  { %v68_v21 = vmax.f32 %v66_v18, 0.0  ;;  %v65_v22 = vmul.f32 %v61_v19, %v61_v19  ;;  %v63_v23 = vmul.f32 0.03125, %v59_v20  ;;  %v75_v31 = vsub.f32 %v44_v1, %v61_v19 }
  0xb0   :  { %v70_v24 = vadd.f32 1e-05, %v68_v21  ;;  %v67_v25 = vsub.f32 %v63_v23, %v65_v22 }
  0xb2   :  { %215 = vrsqrt.f32 %v70_v24  ;;  %v69_v26 = vmax.f32 %v67_v25, 0.0 }
  0xb4   :  { %v71_v27 = vadd.f32 1e-05, %v69_v26 }
  0xb6   :  { %217 = vrsqrt.f32 %v71_v27 }
  0xbf   :  { %v216_v29 = vpop.eup %215 }
  0xc0   :  { %v76_v30 = vmul.f32 %v216_v29, %v74_v28 }
  0xc2   :  { %207 = vmatprep.mubr.msk.f32.mxu0 %vm45_vm0, %v76_v30 }
  0xc3   :  { %v218_v32 = vpop.eup %217 }
  0xc4   :  { %v77_v33 = vmul.f32 %v218_v32, %v75_v31 }
  0xc6   :  { %208 = vmatmul.mubr.msk.f32.vlgmr.msra.gmra.mxu0 %vm45_vm0, %v77_v33 }
 0x186   :  { %v209_v35 = vpop.f32.mrf.mxu0 }
 0x187   :  { %v167_v36 = vadd.f32 %v209_v35, %v190_v34 }
 0x188   :  { %v161_v37 = vpop.f32.mrf.mxu0 }
 0x189   :  { %171 = vst [vmem:[#allocation7 + $0x8] sm:$0xff] %v167_v36  ;;  %v162_v38 = vadd.f32 %v190_v34, %v161_v37 }
 0x18b   :  { %170 = vst [vmem:[#allocation7] sm:$0xff] %v162_v38 }
 0x18c   :  { %270 = shalt.err (!%p267_p0)
}
 0x18d   :  { %183 = dma.vmem_to_hbm [thread:$0]  %s178_s25, 256, %s340_s3, [#allocation4], %s286_s15, %s286_s15, %s287_s16  }
 0x18e   :  { %283 = dma.done.wait [#allocation4], 256  }
 0x18f   :  { %284 = vsyncadd [#allocation4], 4294967040 }
 0x190   :  { %187 = vsyncpa [#allocation3], 1 }
 0x191   :  { %188 = vsyncpa [#allocation6], 1 }
 0x192   :  { %189 = vsyncpa [#allocation4], 1 }

</bundles_post_ra>
